<compile_context>
chip_gen: v7x
topology: tpu7x:2x2x1
jax: 0.10.0
libtpu: 0.0.40
codegen_flags: <defaults>
</compile_context>

<pallas_src>
import functools

import jax
import jax.numpy as jnp
from jax.experimental import pallas as pl
from jax.experimental.pallas import tpu as pltpu


def _qk_proj_kernel(x_ref, wq_ref, wk_ref, bq_ref, bk_ref, q_ref, k_ref):
    # x: (TM, E); wq/wk: (E, E); bq/bk: (1, E) -> q/k: (TM, E)
    x = x_ref[...]
    q = jnp.dot(x, wq_ref[...], preferred_element_type=jnp.float32) + bq_ref[...]
    k = jnp.dot(x, wk_ref[...], preferred_element_type=jnp.float32) + bk_ref[...]
    q_ref[...] = q.astype(q_ref.dtype)
    k_ref[...] = k.astype(k_ref.dtype)


@functools.partial(jax.jit, static_argnames=("tm",))
def scaled_dot_product_attention_fwd(query, in_proj_weight, in_proj_bias, *, tm=512):
    """Returns (q, k), each shaped like `query` = (tgt_len, bsz, embed_dim)."""
    tgt_len, bsz, embed_dim = query.shape
    assert in_proj_weight.shape == (2 * embed_dim, embed_dim)
    assert in_proj_bias.shape == (2 * embed_dim,)
    scaling = float(embed_dim) ** (-0.5)

    m = tgt_len * bsz
    x2d = query.reshape(m, embed_dim)

    # One-time parameter prep (tiny, done by XLA outside the kernel):
    # pre-transpose, split q/k halves, and fold the q scaling into w_q / b_q.
    w_t = in_proj_weight.T                                   # (E, 2E)
    w_q = (w_t[:, :embed_dim] * scaling).astype(query.dtype) # (E, E)
    w_k = w_t[:, embed_dim:].astype(query.dtype)             # (E, E)
    b_q = (in_proj_bias[:embed_dim] * scaling).reshape(1, embed_dim)
    b_k = in_proj_bias[embed_dim:].reshape(1, embed_dim)

    # Tile rows; block shapes must have last-2 dims divisible by (8, 128) or
    # equal the full array dims.  E is always the full dim; TM must be a
    # multiple of 8 unless it covers all of M.
    if m <= tm:
        tm_eff = m
    else:
        tm_eff = (tm // 8) * 8
        tm_eff = max(tm_eff, 8)
    grid_m = pl.cdiv(m, tm_eff)

    dtype_bytes = jnp.dtype(query.dtype).itemsize
    cost = pl.CostEstimate(
        flops=2 * m * embed_dim * (2 * embed_dim),
        transcendentals=0,
        bytes_accessed=(3 * m * embed_dim + 2 * embed_dim * embed_dim
                        + 2 * embed_dim) * dtype_bytes,
    )

    q2d, k2d = pl.pallas_call(
        _qk_proj_kernel,
        out_shape=(
            jax.ShapeDtypeStruct((m, embed_dim), query.dtype),
            jax.ShapeDtypeStruct((m, embed_dim), query.dtype),
        ),
        grid=(grid_m,),
        in_specs=[
            pl.BlockSpec((tm_eff, embed_dim), lambda i: (i, 0)),        # x tile
            pl.BlockSpec((embed_dim, embed_dim), lambda i: (0, 0)),     # w_q (resident)
            pl.BlockSpec((embed_dim, embed_dim), lambda i: (0, 0)),     # w_k (resident)
            pl.BlockSpec((1, embed_dim), lambda i: (0, 0)),             # b_q (resident)
            pl.BlockSpec((1, embed_dim), lambda i: (0, 0)),             # b_k (resident)
        ],
        out_specs=(
            pl.BlockSpec((tm_eff, embed_dim), lambda i: (i, 0)),
            pl.BlockSpec((tm_eff, embed_dim), lambda i: (i, 0)),
        ),
        compiler_params=pltpu.CompilerParams(
            dimension_semantics=("parallel",),      # no carry -> shard over TCs (v7x)
            vmem_limit_bytes=48 << 20,              # fits v7x's 64 MiB VMEM with headroom
        ),
        cost_estimate=cost,
    )(x2d, w_q, w_k, b_q, b_k)

    return (q2d.reshape(tgt_len, bsz, embed_dim),
            k2d.reshape(tgt_len, bsz, embed_dim))


def _xavier_uniform(key, shape, dtype=jnp.float32):
    fan_out, fan_in = shape
    limit = (6.0 / (fan_in + fan_out)) ** 0.5
    return jax.random.uniform(key, shape, dtype, minval=-limit, maxval=limit)


if __name__ == "__main__":
    embed_dim = 32
    tgt_len = 8
    bsz = 2

    root = jax.random.PRNGKey(0)
    k_q, k_k, k_w, k_b = jax.random.split(root, 4)

    query = jax.random.normal(k_q, (tgt_len, bsz, embed_dim), jnp.float32)
    key = jax.random.normal(k_k, (tgt_len, bsz, embed_dim), jnp.float32)  # unused by forward

    # Deterministic parameter init (xavier_uniform weight; the PyTorch module's
    # in_proj_bias ends up uninitialized, so use a random bias for the check).
    in_proj_weight = _xavier_uniform(k_w, (2 * embed_dim, embed_dim))
    in_proj_bias = jax.random.normal(k_b, (2 * embed_dim,), jnp.float32) * 0.1

    q_out, k_out = scaled_dot_product_attention_fwd(query, in_proj_weight, in_proj_bias)
    jax.block_until_ready((q_out, k_out))

    # Reference check in plain JAX.
    proj_ref = query @ in_proj_weight.T + in_proj_bias
    q_ref = proj_ref[..., :embed_dim] * (embed_dim ** -0.5)
    k_ref = proj_ref[..., embed_dim:]
    assert jnp.allclose(q_out, q_ref, atol=1e-5, rtol=1e-5)
    assert jnp.allclose(k_out, k_ref, atol=1e-5, rtol=1e-5)

    print("KERNEL_OK")
</pallas_src>

<mosaic_0001>
module attributes {stable_mosaic.version = 11 : i64} {
  func.func @_qk_proj_kernel(%arg0: i32, %arg1: memref<16x32xf32, #tpu.memory_space<vmem>>, %arg2: memref<32x32xf32, #tpu.memory_space<vmem>>, %arg3: memref<32x32xf32, #tpu.memory_space<vmem>>, %arg4: memref<1x32xf32, #tpu.memory_space<vmem>>, %arg5: memref<1x32xf32, #tpu.memory_space<vmem>>, %arg6: memref<16x32xf32, #tpu.memory_space<vmem>>, %arg7: memref<16x32xf32, #tpu.memory_space<vmem>>) attributes {dimension_semantics = [#tpu.dimension_semantics<parallel>], iteration_bounds = array<i64: 1>, scalar_prefetch = 0 : i64, scratch_operands = 0 : i64, tpu.core_type = #tpu.core_type<tc>, window_params = [{transform_indices = @transform_0, window_bounds = array<i64: 16, 32>}, {pipeline_mode = #tpu.pipeline_mode<synchronous>, transform_indices = @transform_1, window_bounds = array<i64: 32, 32>}, {pipeline_mode = #tpu.pipeline_mode<synchronous>, transform_indices = @transform_2, window_bounds = array<i64: 32, 32>}, {pipeline_mode = #tpu.pipeline_mode<synchronous>, transform_indices = @transform_3, window_bounds = array<i64: 1, 32>}, {pipeline_mode = #tpu.pipeline_mode<synchronous>, transform_indices = @transform_4, window_bounds = array<i64: 1, 32>}, {transform_indices = @transform_5, window_bounds = array<i64: 16, 32>}, {transform_indices = @transform_6, window_bounds = array<i64: 16, 32>}]} {
    %c0 = arith.constant 0 : index
    %c0_0 = arith.constant 0 : index
    %0 = vector.load %arg1[%c0, %c0_0] : memref<16x32xf32, #tpu.memory_space<vmem>>, vector<16x32xf32>
    %c0_1 = arith.constant 0 : index
    %c0_2 = arith.constant 0 : index
    %1 = vector.load %arg2[%c0_1, %c0_2] : memref<32x32xf32, #tpu.memory_space<vmem>>, vector<32x32xf32>
    %cst = arith.constant dense<0.000000e+00> : vector<16x32xf32>
    %2 = tpu.matmul %0, %1, %cst {dimension_numbers = #tpu.dot_dimension_numbers<[1], [0], [0], [1], [0, 0, 1, 1], [], []>} : vector<16x32xf32>, vector<32x32xf32>, vector<16x32xf32> -> vector<16x32xf32>
    %c0_3 = arith.constant 0 : index
    %c0_4 = arith.constant 0 : index
    %3 = vector.load %arg4[%c0_3, %c0_4] : memref<1x32xf32, #tpu.memory_space<vmem>>, vector<1x32xf32>
    %4 = vector.broadcast %3 : vector<1x32xf32> to vector<16x32xf32>
    %5 = arith.addf %2, %4 : vector<16x32xf32>
    %c0_5 = arith.constant 0 : index
    %c0_6 = arith.constant 0 : index
    %6 = vector.load %arg3[%c0_5, %c0_6] : memref<32x32xf32, #tpu.memory_space<vmem>>, vector<32x32xf32>
    %cst_7 = arith.constant dense<0.000000e+00> : vector<16x32xf32>
    %7 = tpu.matmul %0, %6, %cst_7 {dimension_numbers = #tpu.dot_dimension_numbers<[1], [0], [0], [1], [0, 0, 1, 1], [], []>} : vector<16x32xf32>, vector<32x32xf32>, vector<16x32xf32> -> vector<16x32xf32>
    %c0_8 = arith.constant 0 : index
    %c0_9 = arith.constant 0 : index
    %8 = vector.load %arg5[%c0_8, %c0_9] : memref<1x32xf32, #tpu.memory_space<vmem>>, vector<1x32xf32>
    %9 = vector.broadcast %8 : vector<1x32xf32> to vector<16x32xf32>
    %10 = arith.addf %7, %9 : vector<16x32xf32>
    %c0_10 = arith.constant 0 : index
    %c0_11 = arith.constant 0 : index
    %11 = vector.load %arg6[%c0_10, %c0_11] : memref<16x32xf32, #tpu.memory_space<vmem>>, vector<16x32xf32>
    tpu.vector_store %arg6[%c0_10, %c0_11], %5 {strides = array<i32>} : memref<16x32xf32, #tpu.memory_space<vmem>>, vector<16x32xf32>,
    %c0_12 = arith.constant 0 : index
    %c0_13 = arith.constant 0 : index
    %12 = vector.load %arg7[%c0_12, %c0_13] : memref<16x32xf32, #tpu.memory_space<vmem>>, vector<16x32xf32>
    tpu.vector_store %arg7[%c0_12, %c0_13], %10 {strides = array<i32>} : memref<16x32xf32, #tpu.memory_space<vmem>>, vector<16x32xf32>,
    return
  }
  func.func @transform_0(%arg0: i32) -> (i32, i32) {
    %c0_i32 = arith.constant 0 : i32
    %c0_i32_0 = arith.constant 0 : i32
    return %arg0, %c0_i32 : i32, i32
  }
  func.func @transform_1(%arg0: i32) -> (i32, i32) {
    %c0_i32 = arith.constant 0 : i32
    %c0_i32_0 = arith.constant 0 : i32
    %c0_i32_1 = arith.constant 0 : i32
    return %c0_i32, %c0_i32_0 : i32, i32
  }
  func.func @transform_2(%arg0: i32) -> (i32, i32) {
    %c0_i32 = arith.constant 0 : i32
    %c0_i32_0 = arith.constant 0 : i32
    %c0_i32_1 = arith.constant 0 : i32
    return %c0_i32, %c0_i32_0 : i32, i32
  }
  func.func @transform_3(%arg0: i32) -> (i32, i32) {
    %c0_i32 = arith.constant 0 : i32
    %c0_i32_0 = arith.constant 0 : i32
    %c0_i32_1 = arith.constant 0 : i32
    return %c0_i32, %c0_i32_0 : i32, i32
  }
  func.func @transform_4(%arg0: i32) -> (i32, i32) {
    %c0_i32 = arith.constant 0 : i32
    %c0_i32_0 = arith.constant 0 : i32
    %c0_i32_1 = arith.constant 0 : i32
    return %c0_i32, %c0_i32_0 : i32, i32
  }
  func.func @transform_5(%arg0: i32) -> (i32, i32) {
    %c0_i32 = arith.constant 0 : i32
    %c0_i32_0 = arith.constant 0 : i32
    return %arg0, %c0_i32 : i32, i32
  }
  func.func @transform_6(%arg0: i32) -> (i32, i32) {
    %c0_i32 = arith.constant 0 : i32
    %c0_i32_0 = arith.constant 0 : i32
    return %arg0, %c0_i32 : i32, i32
  }
}

</mosaic_0001>

<bundles_post_ra>
// kernel: scaled_dot_product_attention_fwd.1
= control target key start
LH: loop header
LB: loop body
LE: loop exit
PB: predicated region body
PF: predicated region fallthrough
CT: control target
= control target key end

     0   :  { %12 = vsyncpa [#allocation3], 0  ;;  %vm37_vm0 = vcmask 261120   ;;  %s463_s0 = inlined_call_operand.vmem [shape: f32[16,32], index: 0, kind: input, shape index: {}]   ;;  %s464_s1 = inlined_call_operand.vmem [shape: f32[32,32], index: 1, kind: input, shape index: {}]   ;;  %s465_s2 = inlined_call_operand.vmem [shape: f32[32,32], index: 2, kind: input, shape index: {}]   ;;  %s466_s3 = inlined_call_operand.vmem [shape: f32[1,32], index: 3, kind: input, shape index: {}]   ;;  %s467_s4 = inlined_call_operand.vmem [shape: f32[1,32], index: 4, kind: input, shape index: {}]   ;;  %s468_s5 = inlined_call_operand.hbm [shape: f32[16,32], index: 5, kind: output, shape index: {0}]   ;;  %s469_s6 = inlined_call_operand.hbm [shape: f32[16,32], index: 6, kind: output, shape index: {1}]  }
   0x1   :  { %v26_v0 = vld [vmem:[%s464_s1] sm:$0xff]  ;;  %v27_v1 = vld [vmem:[%s464_s1 + $0x8] sm:$0xff]  ;;  %v28_v5 = vld [vmem:[%s464_s1 + $0x10] sm:$0xff] }
   0x2   :  { %v119_v2 = vld [vmem:[%s465_s2] sm:$0xff]  ;;  %v281_v3 = vpack.c.bf16 %v27_v1, %v26_v0  ;;  %v120_v4 = vld [vmem:[%s465_s2 + $0x8] sm:$0xff]  ;;  %v29_v6 = vld [vmem:[%s464_s1 + $0x18] sm:$0xff] }
   0x3   :  { %v289_v7 = vpack.c.bf16 %v120_v4, %v119_v2  ;;  %v285_v8 = vpack.c.bf16 %v29_v6, %v28_v5  ;;  %v121_v9 = vld [vmem:[%s465_s2 + $0x10] sm:$0xff]  ;;  %v122_v10 = vld [vmem:[%s465_s2 + $0x18] sm:$0xff]  ;;  %v24_v11 = vld [vmem:[%s463_s0] sm:$0xff] }
   0x4   :  { %282 = vmatprep.subr.bf16.mxu0 %v281_v3  ;;  %v293_v12 = vpack.c.bf16 %v122_v10, %v121_v9  ;;  %267 = vmatprep.mubr.msk.f32.mxu0 %vm37_vm0, %v24_v11 }
   0x5   :  { %13 = vsyncpa [#allocation5], 0  ;;  %290 = vmatprep.subr.bf16.mxu1 %v289_v7  ;;  %284 = vmatpush3.bf16.msra.mxu0 %v281_v3  ;;  %v25_v13 = vld [vmem:[%s463_s0 + $0x8] sm:$0xff]  ;;  %v241_v14 = vld [vmem:[%s466_s3] ss:$0 sm:$0xff]  ;;  %s349_s17 = smov [#allocation2]  }
   0x6   :  { %292 = vmatpush3.bf16.msra.mxu1 %v289_v7  ;;  %286 = vmatprep.subr.bf16.mxu0 %v285_v8  ;;  %s214_s18 = sshll.u32 %s349_s17, 4  ;;  %v244_v15 = vld [vmem:[%s467_s4] ss:$0 sm:$0xff]  ;;  %s350_s21 = smov [#allocation4]   ;;  %s215_s18 = int_to_ptr.vmem [resolvable:$true] %s214_s18 }
   0x7   :  { %294 = vmatprep.subr.bf16.mxu1 %v293_v12  ;;  %278 = vmatprep.mubr.msk.f32.mxu1 %vm37_vm0, %v24_v11  ;;  %s226_s22 = sshll.u32 %s350_s21, 4  ;;  %s301_s0 = scalar_lea.vmem %s215_s18, 256  ;;  %s429_s22 = int_to_ptr.vmem [resolvable:$true] %s226_s22 }
   0x8   :  { %p302_p0 = scmp.ne.s32.totalorder %s215_s18, %s301_s0  ;;  %p306_p1 = scmp.lt.s32.totalorder %s215_s18, %s215_s18 }
   0x9   :  { %288 = vmatpush3.bf16.msra.mxu0 %v285_v8  ;;  %p307_p2 = scmp.lt.s32.totalorder %s301_s0, %s301_s0 }
   0xa   :  { %296 = vmatpush3.bf16.msra.mxu1 %v293_v12 }
   0xb   :  { %p308_p3 = por %p307_p2, %p306_p1 }
   0xc   :  { %268 = vmatmul.mubr.msk.f32.vlgmr.msra.gmra.mrb[0].mxu0 %vm37_vm0, %v25_v13 }
   0xd   :  { %279 = vmatmul.mubr.msk.f32.vlgmr.msra.gmra.mrb[0].mxu1 %vm37_vm0, %v25_v13  ;;  %p309_p4 = pnand %p308_p3, %p302_p0 }
  0xdf   :  { %v269_v16 = vpop.f32.mrb[0].mxu0 }
  0xe0   :  { %v116_v17 = vadd.f32 %v269_v16, %v241_v14  ;;  %v280_v18 = vpop.f32.mrb[0].mxu1  ;;  %v110_v19 = vpop.f32.mrb[1].mxu0 }
  0xe1   :  { %v202_v20 = vadd.f32 %v280_v18, %v244_v15  ;;  %v111_v21 = vadd.f32 %v241_v14, %v110_v19  ;;  %v196_v22 = vpop.f32.mrb[1].mxu1 }
  0xe2   :  { %206 = vst.msk [vmem:[#allocation2 + $0x8] sm:$0xff] %vm37_vm0, %v116_v17  ;;  %v197_v23 = vadd.f32 %v244_v15, %v196_v22 }
  0xe3   :  { %208 = vst.msk [vmem:[#allocation4 + $0x8] sm:$0xff] %vm37_vm0, %v202_v20  ;;  %205 = vst.msk [vmem:[#allocation2] sm:$0xff] %vm37_vm0, %v111_v21 }
  0xe4   :  { %207 = vst.msk [vmem:[#allocation4] sm:$0xff] %vm37_vm0, %v197_v23 }
  0xe5   :  { %312 = shalt.err (!%p309_p4)
}
  0xe6   :  { %s313_s23 = scalar_lea.hbm %s468_s5, 256 }
  0xe7   :  { %p314_p5 = scmp.ne.s32.totalorder %s468_s5, %s313_s23  ;;  %p317_p6 = scmp.lt.u32.totalorder %s313_s23, %s468_s5 }
  0xe9   :  { %p319_p7 = pnand %p317_p6, %p314_p5 }
  0xeb   :  { %322 = shalt.err (!%p319_p7)
}
  0xec   :  { %s351_s28 = smov 128   ;;  %s352_s29 = smov 8  }
  0xed   :  { %220 = dma.vmem_to_hbm [thread:$0]  %s215_s18, 256, %s468_s5, [#allocation3], %s351_s28, %s351_s28, %s352_s29  }
  0xee   :  { %s323_s8 = scalar_lea.vmem %s429_s22, 256  ;;  %p328_p9 = scmp.lt.s32.totalorder %s429_s22, %s429_s22 }
  0xef   :  { %p324_p8 = scmp.ne.s32.totalorder %s429_s22, %s323_s8  ;;  %p329_p10 = scmp.lt.s32.totalorder %s323_s8, %s323_s8 }
  0xf1   :  { %p330_p11 = por %p329_p10, %p328_p9 }
  0xf3   :  { %p331_p12 = pnand %p330_p11, %p324_p8 }
  0xf5   :  { %334 = shalt.err (!%p331_p12)
}
  0xf6   :  { %s335_s11 = scalar_lea.hbm %s469_s6, 256 }
  0xf7   :  { %p336_p13 = scmp.ne.s32.totalorder %s469_s6, %s335_s11  ;;  %p339_p0 = scmp.lt.u32.totalorder %s335_s11, %s469_s6 }
  0xf9   :  { %p341_p1 = pnand %p339_p0, %p336_p13 }
  0xfb   :  { %344 = shalt.err (!%p341_p1)
}
  0xfc   :  { %232 = dma.vmem_to_hbm [thread:$0]  %s429_s22, 256, %s469_s6, [#allocation5], %s351_s28, %s351_s28, %s352_s29  }
  0xfd   :  { %345 = dma.done.wait [#allocation3], 256  }
  0xfe   :  { %346 = vsyncadd [#allocation3], 4294967040 }
  0xff   :  { %347 = dma.done.wait [#allocation5], 256  }
 0x100   :  { %348 = vsyncadd [#allocation5], 4294967040 }
 0x101   :  { %239 = vsyncpa [#allocation3], 1 }
 0x102   :  { %240 = vsyncpa [#allocation5], 1 }

</bundles_post_ra>
